<compile_context>
chip_gen: v7x
topology: tpu7x:2x2x1
jax: 0.10.0
libtpu: 0.0.40
codegen_flags: <defaults>
</compile_context>

<pallas_src>
import functools

import jax
import jax.numpy as jnp
from jax.experimental import pallas as pl
from jax.experimental.pallas import tpu as pltpu


def _se_kernel(x_ref, w1_ref, w2_ref, o_ref, *, inv_hw):
    # x_ref: (Bt, C, HWp)   w1_ref: (C, Cr)   w2_ref: (Cr, C)   o_ref: (Bt, C, HWp)
    x = x_ref[...]                                            # native dtype, no copy upcast

    # Squeeze: global average pool over the (zero-padded) lane axis.
    # Padded lanes are zero; divide by the true H*W so the mean is unbiased.
    pooled = jnp.sum(x, axis=-1, dtype=jnp.float32) * inv_hw  # (Bt, C) f32

    # Excite: two bias-free linears done on the VPU (broadcast-mul + reduce);
    # with M = Bt and N = C//r these would waste the MXU + result-FIFO latency.
    w1 = w1_ref[...].astype(jnp.float32)                      # (C, Cr)
    w2 = w2_ref[...].astype(jnp.float32)                      # (Cr, C)
    h = jnp.sum(pooled[:, :, None] * w1[None, :, :], axis=1)  # (Bt, Cr)
    h = jnp.where(h >= 0, h, 0.01 * h)                        # LeakyReLU(0.01)
    s = jnp.sum(h[:, :, None] * w2[None, :, :], axis=1)       # (Bt, C)
    s = jax.nn.sigmoid(s)                                     # Sigmoid

    # Scale: broadcast channel weights over spatial dims, in native dtype.
    o_ref[...] = (x * s[:, :, None].astype(x.dtype)).astype(o_ref.dtype)


@functools.partial(jax.jit, static_argnames=("vmem_budget_bytes",))
def se_block(x_nchw, w1, w2, *, vmem_budget_bytes=24 << 20):
    """x_nchw: (B, C, H, W); w1: (C, C//r); w2: (C//r, C) -> (B, C, H, W)."""
    b, c, h, w = x_nchw.shape
    hw = h * w
    hw_pad = ((hw + 127) // 128) * 128                        # lane-dense last dim
    cr = w1.shape[1]

    x = x_nchw.reshape(b, c, hw)
    if hw_pad != hw:
        x = jnp.pad(x, ((0, 0), (0, 0), (0, hw_pad - hw)))    # zero pad (pool uses true hw)

    itemsize = jnp.dtype(x_nchw.dtype).itemsize
    # live VMEM ~ 2 (double-buffer) * 2 (in + out) * Bt * C * HWp * itemsize
    per_batch = 4 * c * hw_pad * itemsize
    bt = max(1, min(b, vmem_budget_bytes // max(per_batch, 1)))
    while bt > 1 and (b // bt) < 2:       # keep >= 2 grid steps (pipeline / 2 TCs on v7x)
        bt -= 1
    while b % bt:                          # ensure even division
        bt -= 1
    grid = (b // bt,)

    kernel = functools.partial(_se_kernel, inv_hw=float(1.0 / hw))

    cost = pl.CostEstimate(
        flops=2 * b * c * hw + 4 * b * c * cr,
        transcendentals=b * c,
        bytes_accessed=2 * b * c * hw_pad * itemsize,
    )

    out = pl.pallas_call(
        kernel,
        out_shape=jax.ShapeDtypeStruct((b, c, hw_pad), x_nchw.dtype),
        grid_spec=pltpu.PrefetchScalarGridSpec(
            num_scalar_prefetch=0,
            grid=grid,
            in_specs=[
                pl.BlockSpec((bt, c, hw_pad), lambda i: (i, 0, 0)),   # batch-tile of x
                pl.BlockSpec((c, cr), lambda i: (0, 0)),              # full w1
                pl.BlockSpec((cr, c), lambda i: (0, 0)),              # full w2
            ],
            out_specs=pl.BlockSpec((bt, c, hw_pad), lambda i: (i, 0, 0)),
        ),
        input_output_aliases={0: 0},      # reuse the (fresh, padded) x buffer for the output
        compiler_params=pltpu.CompilerParams(
            dimension_semantics=("parallel",),
            vmem_limit_bytes=48 << 20,
        ),
        cost_estimate=cost,
    )(x, w1, w2)

    if hw_pad != hw:
        out = out[:, :, :hw]
    return out.reshape(b, c, h, w)


def se_block_ref(x_nchw, w1, w2):
    pooled = jnp.mean(x_nchw, axis=(2, 3))                    # (B, C)
    h = pooled @ w1
    h = jnp.where(h >= 0, h, 0.01 * h)
    s = jax.nn.sigmoid(h @ w2)
    return x_nchw * s[:, :, None, None]


if __name__ == "__main__":
    key = jax.random.PRNGKey(0)
    B, C = 2, 32
    reduction = 16
    Cr = C // reduction

    kx, k1, k2, kx2 = jax.random.split(key, 4)
    # nn.Linear(channels, channels//reduction, bias=False): weight (Cr, C);
    # y = x @ W.T, so we pass the transposed matrices (C, Cr) / (Cr, C).
    w1 = (jax.random.normal(k1, (Cr, C), dtype=jnp.float32) * 0.1).T   # (C, Cr)
    w2 = (jax.random.normal(k2, (C, Cr), dtype=jnp.float32) * 0.1).T   # (Cr, C)

    # Case 1: H*W already a multiple of 128 (16x16 = 256).
    x = jax.random.normal(kx, (B, C, 16, 16), dtype=jnp.float32)
    out = jax.block_until_ready(se_block(x, w1, w2))
    ref = se_block_ref(x, w1, w2)
    assert out.shape == x.shape
    assert jnp.allclose(out, ref, atol=1e-5, rtol=1e-5)

    # Case 2: lane-sparse spatial size (14x14 = 196 -> padded to 256 internally).
    x2 = jax.random.normal(kx2, (B, C, 14, 14), dtype=jnp.float32)
    out2 = jax.block_until_ready(se_block(x2, w1, w2))
    ref2 = se_block_ref(x2, w1, w2)
    assert out2.shape == x2.shape
    assert jnp.allclose(out2, ref2, atol=1e-5, rtol=1e-5)

    print("KERNEL_OK")
</pallas_src>

<mosaic_0001>
module attributes {stable_mosaic.version = 11 : i64} {
  func.func @_se_kernel(%arg0: i32, %arg1: memref<1x32x256xf32, #tpu.memory_space<vmem>>, %arg2: memref<32x2xf32, #tpu.memory_space<vmem>>, %arg3: memref<2x32xf32, #tpu.memory_space<vmem>>, %arg4: memref<1x32x256xf32, #tpu.memory_space<vmem>>) attributes {dimension_semantics = [#tpu.dimension_semantics<parallel>], iteration_bounds = array<i64: 2>, scalar_prefetch = 0 : i64, scratch_operands = 0 : i64, tpu.core_type = #tpu.core_type<tc>, window_params = [{transform_indices = @transform_0, window_bounds = array<i64: 1, 32, 256>}, {pipeline_mode = #tpu.pipeline_mode<synchronous>, transform_indices = @transform_1, window_bounds = array<i64: 32, 2>}, {pipeline_mode = #tpu.pipeline_mode<synchronous>, transform_indices = @transform_2, window_bounds = array<i64: 2, 32>}, {transform_indices = @transform_3, window_bounds = array<i64: 1, 32, 256>}]} {
    %c0 = arith.constant 0 : index
    %c0_0 = arith.constant 0 : index
    %c0_1 = arith.constant 0 : index
    %0 = vector.load %arg1[%c0, %c0_0, %c0_1] : memref<1x32x256xf32, #tpu.memory_space<vmem>>, vector<1x32x256xf32>
    %cst = arith.constant dense<0.000000e+00> : vector<1x32xf32>
    %1 = vector.multi_reduction <add>, %0, %cst [2] : vector<1x32x256xf32> to vector<1x32xf32>
    %cst_2 = arith.constant 3.906250e-03 : f32
    %2 = vector.broadcast %cst_2 : f32 to vector<1x32xf32>
    %3 = arith.mulf %1, %2 : vector<1x32xf32>
    %c0_3 = arith.constant 0 : index
    %c0_4 = arith.constant 0 : index
    %4 = vector.load %arg2[%c0_3, %c0_4] : memref<32x2xf32, #tpu.memory_space<vmem>>, vector<32x2xf32>
    %c0_5 = arith.constant 0 : index
    %c0_6 = arith.constant 0 : index
    %5 = vector.load %arg3[%c0_5, %c0_6] : memref<2x32xf32, #tpu.memory_space<vmem>>, vector<2x32xf32>
    %6 = vector.shape_cast %3 : vector<1x32xf32> to vector<1x32x1xf32>
    %7 = vector.shape_cast %4 : vector<32x2xf32> to vector<1x32x2xf32>
    %8 = vector.broadcast %6 : vector<1x32x1xf32> to vector<1x32x2xf32>
    %9 = arith.mulf %8, %7 : vector<1x32x2xf32>
    %cst_7 = arith.constant dense<0.000000e+00> : vector<1x2xf32>
    %10 = vector.multi_reduction <add>, %9, %cst_7 [1] : vector<1x32x2xf32> to vector<1x2xf32>
    %cst_8 = arith.constant 0.000000e+00 : f32
    %11 = vector.broadcast %cst_8 : f32 to vector<1x2xf32>
    %12 = arith.cmpf oge, %10, %11 : vector<1x2xf32>
    %cst_9 = arith.constant 0.00999999977 : f32
    %13 = vector.broadcast %cst_9 : f32 to vector<1x2xf32>
    %14 = arith.mulf %13, %10 : vector<1x2xf32>
    %15 = arith.select %12, %10, %14 : vector<1x2xi1>, vector<1x2xf32>
    %16 = vector.shape_cast %15 : vector<1x2xf32> to vector<1x2x1xf32>
    %17 = vector.shape_cast %5 : vector<2x32xf32> to vector<1x2x32xf32>
    %18 = vector.broadcast %16 : vector<1x2x1xf32> to vector<1x2x32xf32>
    %19 = arith.mulf %18, %17 : vector<1x2x32xf32>
    %cst_10 = arith.constant dense<0.000000e+00> : vector<1x32xf32>
    %20 = vector.multi_reduction <add>, %19, %cst_10 [1] : vector<1x2x32xf32> to vector<1x32xf32>
    %21 = arith.negf %20 : vector<1x32xf32>
    %22 = math.exp %21 : vector<1x32xf32>
    %cst_11 = arith.constant 1.000000e+00 : f32
    %23 = vector.broadcast %cst_11 : f32 to vector<1x32xf32>
    %24 = arith.addf %23, %22 : vector<1x32xf32>
    %25 = arith.divf %23, %24 : vector<1x32xf32>
    %26 = vector.shape_cast %25 : vector<1x32xf32> to vector<1x32x1xf32>
    %27 = vector.broadcast %26 : vector<1x32x1xf32> to vector<1x32x256xf32>
    %28 = arith.mulf %0, %27 : vector<1x32x256xf32>
    %c0_12 = arith.constant 0 : index
    %c0_13 = arith.constant 0 : index
    %c0_14 = arith.constant 0 : index
    %29 = vector.load %arg4[%c0_12, %c0_13, %c0_14] : memref<1x32x256xf32, #tpu.memory_space<vmem>>, vector<1x32x256xf32>
    tpu.vector_store %arg4[%c0_12, %c0_13, %c0_14], %28 {strides = array<i32>} : memref<1x32x256xf32, #tpu.memory_space<vmem>>, vector<1x32x256xf32>,
    return
  }
  func.func @transform_0(%arg0: i32) -> (i32, i32, i32) {
    %c0_i32 = arith.constant 0 : i32
    %c0_i32_0 = arith.constant 0 : i32
    %c0_i32_1 = arith.constant 0 : i32
    return %arg0, %c0_i32, %c0_i32_0 : i32, i32, i32
  }
  func.func @transform_1(%arg0: i32) -> (i32, i32) {
    %c0_i32 = arith.constant 0 : i32
    %c0_i32_0 = arith.constant 0 : i32
    %c0_i32_1 = arith.constant 0 : i32
    return %c0_i32, %c0_i32_0 : i32, i32
  }
  func.func @transform_2(%arg0: i32) -> (i32, i32) {
    %c0_i32 = arith.constant 0 : i32
    %c0_i32_0 = arith.constant 0 : i32
    %c0_i32_1 = arith.constant 0 : i32
    return %c0_i32, %c0_i32_0 : i32, i32
  }
  func.func @transform_3(%arg0: i32) -> (i32, i32, i32) {
    %c0_i32 = arith.constant 0 : i32
    %c0_i32_0 = arith.constant 0 : i32
    %c0_i32_1 = arith.constant 0 : i32
    return %arg0, %c0_i32, %c0_i32_0 : i32, i32, i32
  }
}

</mosaic_0001>

<bundles_post_ra>
// kernel: se_block.1
= control target key start
LH: loop header
LB: loop body
LE: loop exit
PB: predicated region body
PF: predicated region fallthrough
CT: control target
= control target key end

     0   :  { %s379_s12 = smov 0   ;;  %s450_s0 = inlined_call_operand.vmem [shape: f32[2,32,256], index: 0, kind: input, shape index: {}, may-alias: {0,3}]   ;;  %s451_s1 = inlined_call_operand.vmem [shape: f32[32,2], index: 1, kind: input, shape index: {}]   ;;  %s452_s2 = inlined_call_operand.vmem [shape: f32[2,32], index: 2, kind: input, shape index: {}]   ;;  %s453_s3 = inlined_call_operand.vmem [shape: f32[2,32,256], index: 3, kind: output, shape index: {}, may-alias: {0,3}]  }
   0x1 LB: > { %s325_s13 = sadd.s32 4294967295, %s357_s12   ;;  %p329_p0 = scmp.ge.s32.totalorder %s357_s12, 1  ;;  %s357_s12 = sphi %s379_s12, %s13_s12  }
   0x2   : > { %p137_p1 = scmp.lt.s32.totalorder %s357_s12, 3 }
   0x4   : > { %p138_p2 = pnand %p329_p0, %p137_p1 }
   0x5   : > { %p161_p3 = scmp.lt.s32.totalorder (!%p138_p2), %s325_s13, 1  ;;  %v195_v15 = vld [vmem:[%s451_s1] sm:$0xff] (!%p138_p2)  ;;  %v197_v17 = vld [vmem:[%s451_s1 + $0x10] sm:$0xff] (!%p138_p2)  ;;  %v196_v18 = vld [vmem:[%s451_s1 + $0x8] sm:$0xff] (!%p138_p2)  ;;  %vm204_vm0 = vcmask (!%p138_p2), 15360   ;;  %vm225_vm2 = vcmask (!%p138_p2), 254976  }
   0x6   : > { %141 = sbr.rel (%p138_p2) target bundleno = 473 (0x1d9), region = 32  ;;  %v198_v22 = vld [vmem:[%s451_s1 + $0x18] sm:$0xff] (!%p138_p2)  ;;  %v199_v43 = vld [vmem:[%s452_s2] sm:$0x3] (!%p138_p2) }
   0xd   : > { %s455_s13 = smov (!%p161_p3, %s325_s13), 1 }
   0xe   : > { %s337_s14 = sshll.u32 %s455_s13, 6 }
   0xf   : > { %s165_s17 = scalar_lea.vmem %s450_s0, %s337_s14  ;;  %s170_s30 = scalar_lea.vmem %s453_s3, %s337_s14 }
  0x10   : > { %v395_v0 = vld [vmem:[%s165_s17] sm:$0xff]  ;;  %v397_v1 = vld [vmem:[%s165_s17 + $0x8] sm:$0xff]  ;;  %v405_v5 = vld [vmem:[%s165_s17 + $0x10] sm:$0xff] }
  0x11   : > { %v399_v2 = vld [vmem:[%s165_s17 + $0x20] sm:$0xff]  ;;  %v179_v3 = vadd.f32 %v397_v1, %v395_v0  ;;  %v403_v4 = vld [vmem:[%s165_s17 + $0x28] sm:$0xff]  ;;  %v407_v6 = vld [vmem:[%s165_s17 + $0x18] sm:$0xff] }
  0x12   : > { %v185_v7 = vadd.f32 %v403_v4, %v399_v2  ;;  %v411_v8 = vld [vmem:[%s165_s17 + $0x30] sm:$0xff]  ;;  %v413_v9 = vld [vmem:[%s165_s17 + $0x38] sm:$0xff]  ;;  %v182_v10 = vadd.f32 %v407_v6, %v405_v5 }
  0x13   : > { %180 = vadd.xlane.f32.xlu0 %v179_v3  ;;  %v188_v11 = vadd.f32 %v413_v9, %v411_v8 }
  0x14   : > { %186 = vadd.xlane.f32.xlu1 %v185_v7 }
  0x17   : > { %183 = vadd.xlane.f32.xlu0 %v182_v10 }
  0x18   : > { %189 = vadd.xlane.f32.xlu1 %v188_v11 }
  0xa0   : > { %v181_v12 = vpop.xlane.xlu0 %180 }
  0xa1   : > { %v191_v13 = vmul.f32 0.00390625, %v181_v12  ;;  %v187_v14 = vpop.xlane.xlu1 %186 }
  0xa2   : > { %v193_v16 = vmul.f32 0.00390625, %v187_v14 }
  0xa3   : > { %v200_v20 = vmul.f32 %v195_v15, %v191_v13 }
  0xa4   : > { %v184_v19 = vpop.xlane.xlu0 %183  ;;  %v202_v25 = vmul.f32 %v197_v17, %v193_v16 }
  0xa5   : > { %v192_v21 = vmul.f32 0.00390625, %v184_v19  ;;  %v190_v23 = vpop.xlane.xlu1 %189  ;;  %v205_v28 = vsel %vm204_vm0, %v200_v20, 0.0 }
  0xa6   : > { %v194_v24 = vmul.f32 0.00390625, %v190_v23  ;;  %v208_v31 = vsel %vm204_vm0, %v202_v25, 0.0 }
  0xa7   : > { %v201_v26 = vmul.f32 %v196_v18, %v192_v21 }
  0xa8   : > { %v203_v27 = vmul.f32 %v198_v22, %v194_v24 }
  0xa9   : > { %v206_v29 = vsel %vm204_vm0, %v201_v26, 0.0 }
  0xaa   : > { %v207_v30 = vadd.f32 %v206_v29, %v205_v28  ;;  %v210_v32 = vsel %vm204_vm0, %v203_v27, 0.0 }
  0xac   : > { %v209_v33 = vadd.f32 %v208_v31, %v207_v30 }
  0xae   : > { %v211_v34 = vadd.f32 %v210_v32, %v209_v33 }
  0xb0   : > { %v212_v35 = vrot.slane %v211_v34, 4 }
  0xb2   : > { %v213_v36 = vadd.f32 %v212_v35, %v211_v34 }
  0xb4   : > { %v214_v37 = vrot.slane %v213_v36, 2 }
  0xb6   : > { %v215_v38 = vadd.f32 %v214_v37, %v213_v36 }
  0xb8   : > { %v216_v39 = vrot.slane %v215_v38, 1 }
  0xba   : > { %v217_v40 = vadd.f32 %v216_v39, %v215_v38 }
  0xbc   : > { %vm218_vm1 = vcmp.ge.f32.partialorder %v217_v40, 0.0  ;;  %v219_v41 = vmul.f32 0.01, %v217_v40 }
  0xbe   : > { %v220_v42 = vsel %vm218_vm1, %v217_v40, %v219_v41 }
  0xbf   : > { %222 = vbcast.lane.b32.xlu0 %v220_v42, 256 }
 0x131   : > { %v223_v44 = vpop.permute.xlu0 %222 }
 0x132   : > { %v224_v45 = vmul.f32 %v223_v44, %v199_v43 }
 0x134   : > { %v226_v46 = vsel %vm225_vm2, %v224_v45, 0.0 }
 0x135   : > { %v227_v47 = vrot.slane %v226_v46, 4 }
 0x137   : > { %v228_v48 = vadd.f32 %v227_v47, %v226_v46 }
 0x139   : > { %v229_v49 = vrot.slane %v228_v48, 2 }
 0x13b   : > { %v230_v50 = vadd.f32 %v229_v49, %v228_v48 }
 0x13d   : > { %v231_v51 = vrot.slane %v230_v50, 1 }
 0x13f   : > { %v232_v52 = vadd.f32 %v231_v51, %v230_v50 }
 0x141   : > { %v334_v53 = vmul.f32 -1.442695, %v232_v52 }
 0x143   : > { %347 = vpow2.f32 %v334_v53 }
 0x14d   : > { %v348_v54 = vpop.eup %347 }
 0x14e   : > { %v236_v55 = vadd.f32 1.0, %v348_v54 }
 0x150   : > { %349 = vrcp.f32 %v236_v55 }
 0x15a   : > { %v350_v56 = vpop.eup %349 }
 0x15b   : > { %252 = vbcast.lane.b32.xlu0 %v350_v56, 280  ;;  %240 = vbcast.lane.b32.xlu1 %v350_v56, 256 }
 0x15f   : > { %244 = vbcast.lane.b32.xlu1 %v350_v56, 264 }
 0x163   : > { %248 = vbcast.lane.b32.xlu1 %v350_v56, 272 }
 0x1cd   : > { %v253_v57 = vpop.permute.xlu0 %252  ;;  %v241_v58 = vpop.permute.xlu1 %240 }
 0x1ce   : > { %v260_v59 = vmul.f32 %v253_v57, %v411_v8  ;;  %v261_v60 = vmul.f32 %v253_v57, %v413_v9  ;;  %v254_v61 = vmul.f32 %v241_v58, %v395_v0  ;;  %v255_v62 = vmul.f32 %v241_v58, %v397_v1 }
 0x1d0   : > { %268 = vst [vmem:[%s170_s30 + $0x30] sm:$0xff] %v260_v59  ;;  %269 = vst [vmem:[%s170_s30 + $0x38] sm:$0xff] %v261_v60 }
 0x1d1   : > { %262 = vst [vmem:[%s170_s30] sm:$0xff] %v254_v61  ;;  %263 = vst [vmem:[%s170_s30 + $0x8] sm:$0xff] %v255_v62  ;;  %v245_v63 = vpop.permute.xlu1 %244 }
 0x1d2   : > { %v256_v3 = vmul.f32 %v245_v63, %v405_v5  ;;  %v257_v7 = vmul.f32 %v245_v63, %v407_v6 }
 0x1d4   : > { %264 = vst [vmem:[%s170_s30 + $0x10] sm:$0xff] %v256_v3  ;;  %265 = vst [vmem:[%s170_s30 + $0x18] sm:$0xff] %v257_v7 }
 0x1d5   : > { %v249_v10 = vpop.permute.xlu1 %248 }
 0x1d6   : > { %v258_v8 = vmul.f32 %v249_v10, %v399_v2  ;;  %v259_v9 = vmul.f32 %v249_v10, %v403_v4 }
 0x1d8   : > { %266 = vst [vmem:[%s170_s30 + $0x20] sm:$0xff] %v258_v8  ;;  %267 = vst [vmem:[%s170_s30 + $0x28] sm:$0xff] %v259_v9 }
 0x1d9 PF: > { %s13_s12 = sadd.s32 1, %s357_s12  }
 0x1da   : > { %p10_p4 = scmp.ge.s32.totalorder %s13_s12, 4  }
 0x1dc   :  { %12 = sbr.rel (!%p10_p4) target bundleno = 1 (0x1), region = 62 }

</bundles_post_ra>
